<compile_context>
chip_gen: v6e
topology: v6e:2x2x1
jax: 0.10.0
libtpu: 0.0.40
codegen_flags: <defaults>
</compile_context>

<pallas_src>
import functools
import numpy as np
import jax
import jax.numpy as jnp
from jax.experimental import pallas as pl
from jax.experimental.pallas import tpu as pltpu

LAYER_NORM_EPS = 1e-12
LANES = 128


def _round_up(x, m):
    return -(-x // m) * m


# ---------------------------------------------------------------------------
# Pallas kernel: fused two-hot gather (token + expression in ONE matmul) and
# per-row LayerNorm, computed/stored in a lane-dense packed layout.
# ---------------------------------------------------------------------------
def _fused_embed_layernorm_kernel(ids_ref, table_ref, gsum_ref, gamma_ref, beta_ref,
                                  out_ref, *, pack, seg, vocab, dim, eps, chunk):
    tile_p = out_ref.shape[0]
    assert tile_p % chunk == 0
    n_chunks = tile_p // chunk
    inv_d = jnp.float32(1.0 / dim)

    def process(start):
        ids = ids_ref[pl.ds(start, chunk), :]            # (chunk, pack) int32, bit-packed
        tok = ids & 0xFFFF                               # token id  (low 16 bits)
        expr = ids >> 16                                 # expr bin  (high 16 bits, >= 0)

        # ONE two-hot LHS per chunk: lane-group k's K-segment has a 1 at tok[:, k]
        # (token row) and at vocab + expr[:, k] (expression row); a single matmul
        # against the combined table returns tok_emb + expr_emb already placed in
        # lanes [k*dim, (k+1)*dim).
        iota = jax.lax.broadcasted_iota(jnp.int32, (chunk, seg), 1)
        parts = []
        for k in range(pack):                            # static unroll, pack = 128 // dim
            t_id = tok[:, k:k + 1]
            e_id = expr[:, k:k + 1] + vocab
            parts.append(((iota == t_id) | (iota == e_id)).astype(jnp.float32))
        twohot = jnp.concatenate(parts, axis=-1)         # (chunk, pack * seg)

        x = jnp.dot(twohot, table_ref[...],
                    preferred_element_type=jnp.float32)  # (chunk, 128)

        # LayerNorm over each dim-wide lane group (one group == one sequence row),
        # group sums via a block-diagonal 0/1 matrix on the MXU.
        g = gsum_ref[...]
        mean = jnp.dot(x, g, preferred_element_type=jnp.float32) * inv_d
        cen = x - mean
        var = jnp.dot(cen * cen, g, preferred_element_type=jnp.float32) * inv_d  # biased (torch)
        y = cen * jax.lax.rsqrt(var + jnp.float32(eps))
        out_ref[pl.ds(start, chunk), :] = (y * gamma_ref[...] + beta_ref[...]).astype(out_ref.dtype)

    if n_chunks == 1:
        process(0)
    else:
        def body(c, carry):
            process(pl.multiple_of(c * chunk, chunk))
            return carry
        jax.lax.fori_loop(0, n_chunks, body, 0, unroll=True)


def fused_embed_layernorm(packed, ids_flat, *, tile_packed_rows=1024, chunk_rows=256,
                          out_dtype=jnp.float32):
    """ids_flat: (N,) int32 with token id in low 16 bits, expr bin in high 16 bits.
    Returns (N, D) in out_dtype."""
    d = packed["dim"]
    pack = packed["pack"]
    seg = packed["seg"]
    v = packed["vocab"]
    n = ids_flat.shape[0]

    # --- tile selection --------------------------------------------------------
    np_rows = -(-n // pack)                        # packed rows needed
    np8 = _round_up(max(np_rows, 1), 8)            # sublane multiple
    if np8 <= 16:
        tile_p = np8                               # tiny input: one block
    elif np8 <= 2 * tile_packed_rows:
        tile_p = _round_up(-(-np8 // 2), 8)        # >=2 grid steps (v7x: 2 TensorCores)
    else:
        tile_p = tile_packed_rows
    chunk = min(chunk_rows, tile_p)
    tile_p = _round_up(tile_p, chunk)              # whole number of chunks per tile
    np_pad = _round_up(np8, tile_p)

    pad = np_pad * pack - n                        # only the small int id stream is padded
    if pad:
        ids_flat = jnp.pad(ids_flat, (0, pad))     # padded rows use tok=0/expr=0, discarded later
    ids2 = ids_flat.reshape(np_pad, pack)

    out_packed = pl.pallas_call(
        functools.partial(_fused_embed_layernorm_kernel, pack=pack, seg=seg, vocab=v,
                          dim=d, eps=LAYER_NORM_EPS, chunk=chunk),
        out_shape=jax.ShapeDtypeStruct((np_pad, LANES), out_dtype),
        grid_spec=pltpu.PrefetchScalarGridSpec(
            num_scalar_prefetch=0,
            grid=(np_pad // tile_p,),
            in_specs=[
                pl.BlockSpec((tile_p, pack), lambda i: (i, 0)),        # bit-packed ids
                pl.BlockSpec((pack * seg, LANES), lambda i: (0, 0)),   # combined tok+expr table
                pl.BlockSpec((LANES, LANES), lambda i: (0, 0)),        # group-sum matrix
                pl.BlockSpec((1, LANES), lambda i: (0, 0)),            # gamma (packed)
                pl.BlockSpec((1, LANES), lambda i: (0, 0)),            # beta  (packed)
            ],
            out_specs=pl.BlockSpec((tile_p, LANES), lambda i: (i, 0)),
        ),
        compiler_params=pltpu.CompilerParams(
            dimension_semantics=("parallel",),
            # ~3 MiB used at default tile sizes; 32 MiB is safe on every generation
            # (v5e/v6e: 128 MiB physical, v7x: 64 MiB).  Re-budget if tables/tiles grow.
            vmem_limit_bytes=32 * 1024 * 1024,
        ),
    )(ids2, packed["table"], packed["gsum"], packed["gamma_packed"], packed["beta_packed"])

    # Row-major bitcast back to (N, D); padded rows are discarded.
    return out_packed.reshape(np_pad * pack, d)[:n]


# ---------------------------------------------------------------------------
# Parameter construction (deterministic, mirrors GeneExprTransformer.__init__)
# ---------------------------------------------------------------------------
def positional_encoding(dim, num_of_expr_bins, rand_row0, base=60.0):
    """Mirror of GeneExprTransformer.positional_encoding (row 0 random)."""
    max_seq_len = num_of_expr_bins
    pe = np.zeros((max_seq_len + 1, dim), dtype=np.float64)
    position = np.arange(0, max_seq_len, dtype=float)[:, np.newaxis]
    div_term = np.exp(np.arange(0, dim, 2) * -(np.log(base) / dim))
    pe[1:, 0::2] = np.sin(position * div_term)
    pe[1:, 1::2] = np.cos(position * div_term)
    pe[0] = np.asarray(rand_row0, dtype=np.float64)
    return jnp.asarray(pe, dtype=jnp.float32)


def init_params(key, num_tokens, dim, num_expr_bins):
    k_tok, k_pe0 = jax.random.split(key, 2)
    token_emb = jax.random.normal(k_tok, (num_tokens, dim), dtype=jnp.float32)  # nn.Embedding ~ N(0,1)
    expr_emb = positional_encoding(dim, num_expr_bins,
                                   np.asarray(jax.random.normal(k_pe0, (dim,))))
    gamma = jnp.ones((dim,), dtype=jnp.float32)     # nn.LayerNorm defaults
    beta = jnp.zeros((dim,), dtype=jnp.float32)
    return dict(token_emb=token_emb, expr_emb=expr_emb, gamma=gamma, beta=beta)


def prepare_inference_params(params, *, max_table_bytes=8 * 1024 * 1024):
    """One-time packing of the (small) tables into the merged lane-dense kernel layout."""
    token_emb = np.asarray(params["token_emb"], dtype=np.float32)   # (V, D)
    expr_emb = np.asarray(params["expr_emb"], dtype=np.float32)     # (E, D)
    gamma = np.asarray(params["gamma"], dtype=np.float32).reshape(-1)
    beta = np.asarray(params["beta"], dtype=np.float32).reshape(-1)
    v, d = token_emb.shape
    e = expr_emb.shape[0]
    if LANES % d != 0:
        # TODO(synk): plain (rows, D) kernel path for hidden dims that do not divide 128.
        raise NotImplementedError("lane-dense kernel requires dim to divide 128")
    if v > 0xFFFF or e > 0x7FFF:
        raise NotImplementedError("16-bit id packing requires vocab < 65536 and bins < 32768")
    pack = LANES // d
    seg = _round_up(v + e, LANES)                   # lane-aligned K-segment per packed position
    if pack * seg * LANES * 4 > max_table_bytes:
        # TODO(synk): for realistic gene vocabularies switch the token gather to a real row
        # gather (scalar-prefetched ids + pl.Element BlockSpec / DMA gather) and keep the
        # one-hot MXU trick only for the tiny expression table.
        raise NotImplementedError("combined one-hot table too large for VMEM residency")

    # Combined table: segment k = rows [token_emb ; expr_emb ; zero-pad], values
    # placed in lanes [k*d, (k+1)*d) so one matmul lands each row in its lane group.
    table = np.zeros((pack * seg, LANES), dtype=np.float32)
    for k in range(pack):
        r0 = k * seg
        table[r0:r0 + v, k * d:(k + 1) * d] = token_emb
        table[r0 + v:r0 + v + e, k * d:(k + 1) * d] = expr_emb

    lane = np.arange(LANES)
    gsum = ((lane[:, None] // d) == (lane[None, :] // d)).astype(np.float32)
    gamma_packed = np.tile(gamma, pack).reshape(1, LANES)
    beta_packed = np.tile(beta, pack).reshape(1, LANES)

    return dict(dim=d, pack=pack, seg=seg, vocab=v, n_expr_rows=e,
                table=jnp.asarray(table), gsum=jnp.asarray(gsum),
                gamma_packed=jnp.asarray(gamma_packed),
                beta_packed=jnp.asarray(beta_packed))


# ---------------------------------------------------------------------------
# Forward (encoding path)
# ---------------------------------------------------------------------------
def gene_expr_transformer_forward(packed_params, x_ids, expr_bins, *,
                                  tile_packed_rows=1024, chunk_rows=256,
                                  out_dtype=jnp.float32):
    """x_ids: (B, S) int32 gene ids; expr_bins: (B, S) int32 expression-bin ids.
    Returns the encoding, shape (B, S, D)."""
    b, s = x_ids.shape
    d = packed_params["dim"]
    tok = x_ids.reshape(-1).astype(jnp.int32)
    expr = expr_bins.reshape(-1).astype(jnp.int32)
    # NOTE: ids outside [0, V) / [0, E) select all-zero table rows (output becomes beta
    # after LayerNorm) instead of raising like nn.Embedding would.
    ids_packed = tok | (expr << 16)          # token in low 16 bits, expr bin in high 16 bits
    out = fused_embed_layernorm(packed_params, ids_packed,
                                tile_packed_rows=tile_packed_rows,
                                chunk_rows=chunk_rows, out_dtype=out_dtype)
    return out.reshape(b, s, d)


def _reference_forward(params, x_ids, expr_bins):
    tok = params["token_emb"][x_ids]
    expr = params["expr_emb"][expr_bins]
    x = tok + expr
    mean = jnp.mean(x, axis=-1, keepdims=True)
    var = jnp.mean((x - mean) ** 2, axis=-1, keepdims=True)
    xhat = (x - mean) / jnp.sqrt(var + LAYER_NORM_EPS)
    return xhat * params["gamma"] + params["beta"]


if __name__ == "__main__":
    # Small config consistent with the module: num_tokens=100, dim=32,
    # number_of_bins_for_expression_embedding=10, batch=2, seq=8.
    NUM_TOKENS, DIM, NUM_BINS = 100, 32, 10
    B, S = 2, 8

    key = jax.random.PRNGKey(0)
    k_params, k_x, k_e = jax.random.split(key, 3)

    params = init_params(k_params, NUM_TOKENS, DIM, NUM_BINS)
    packed = prepare_inference_params(params)

    x_ids = jax.random.randint(k_x, (B, S), 0, NUM_TOKENS, dtype=jnp.int32)
    # TODO(synk): the reference forward body for the non-GPT/Bert path is not present in the
    # source; expressions are assumed to already be integer bin indices in [0, NUM_BINS].
    expr_bins = jax.random.randint(k_e, (B, S), 0, NUM_BINS + 1, dtype=jnp.int32)

    out = gene_expr_transformer_forward(packed, x_ids, expr_bins)
    out = jax.block_until_ready(out)

    ref = _reference_forward(params, x_ids, expr_bins)
    np.testing.assert_allclose(np.asarray(out), np.asarray(ref), atol=1e-4, rtol=1e-4)

    print("KERNEL_OK")
</pallas_src>

<mosaic_0001>
module attributes {stable_mosaic.version = 11 : i64} {
  func.func @_fused_embed_layernorm_kernel(%arg0: i32, %arg1: memref<8x4xi32, #tpu.memory_space<vmem>>, %arg2: memref<512x128xf32, #tpu.memory_space<vmem>>, %arg3: memref<128x128xf32, #tpu.memory_space<vmem>>, %arg4: memref<1x128xf32, #tpu.memory_space<vmem>>, %arg5: memref<1x128xf32, #tpu.memory_space<vmem>>, %arg6: memref<8x128xf32, #tpu.memory_space<vmem>>) attributes {dimension_semantics = [#tpu.dimension_semantics<parallel>], iteration_bounds = array<i64: 1>, scalar_prefetch = 0 : i64, scratch_operands = 0 : i64, tpu.core_type = #tpu.core_type<tc>, window_params = [{transform_indices = @transform_0, window_bounds = array<i64: 8, 4>}, {pipeline_mode = #tpu.pipeline_mode<synchronous>, transform_indices = @transform_1, window_bounds = array<i64: 512, 128>}, {pipeline_mode = #tpu.pipeline_mode<synchronous>, transform_indices = @transform_2, window_bounds = array<i64: 128, 128>}, {pipeline_mode = #tpu.pipeline_mode<synchronous>, transform_indices = @transform_3, window_bounds = array<i64: 1, 128>}, {pipeline_mode = #tpu.pipeline_mode<synchronous>, transform_indices = @transform_4, window_bounds = array<i64: 1, 128>}, {transform_indices = @transform_5, window_bounds = array<i64: 8, 128>}]} {
    %c0 = arith.constant 0 : index
    %c0_0 = arith.constant 0 : index
    %0 = vector.load %arg1[%c0, %c0_0] : memref<8x4xi32, #tpu.memory_space<vmem>>, vector<8x4xi32>
    %c65535_i32 = arith.constant 65535 : i32
    %1 = vector.broadcast %c65535_i32 : i32 to vector<8x4xi32>
    %2 = arith.andi %0, %1 : vector<8x4xi32>
    %c16_i32 = arith.constant 16 : i32
    %3 = vector.broadcast %c16_i32 : i32 to vector<8x4xi32>
    %4 = arith.shrsi %0, %3 : vector<8x4xi32>
    %5 = tpu.iota {dimensions = array<i32: 1>} : vector<8x128xi32>
    %6 = vector.extract_strided_slice %2 {offsets = [0, 0], sizes = [8, 1], strides = [1, 1]} : vector<8x4xi32> to vector<8x1xi32>
    %7 = vector.extract_strided_slice %4 {offsets = [0, 0], sizes = [8, 1], strides = [1, 1]} : vector<8x4xi32> to vector<8x1xi32>
    %c100_i32 = arith.constant 100 : i32
    %8 = vector.broadcast %c100_i32 : i32 to vector<8x1xi32>
    %9 = arith.addi %7, %8 : vector<8x1xi32>
    %10 = vector.broadcast %6 : vector<8x1xi32> to vector<8x128xi32>
    %11 = arith.cmpi eq, %5, %10 : vector<8x128xi32>
    %12 = vector.broadcast %9 : vector<8x1xi32> to vector<8x128xi32>
    %13 = arith.cmpi eq, %5, %12 : vector<8x128xi32>
    %14 = arith.ori %11, %13 : vector<8x128xi1>
    %15 = arith.extui %14 : vector<8x128xi1> to vector<8x128xi32>
    %16 = arith.sitofp %15 : vector<8x128xi32> to vector<8x128xf32>
    %17 = vector.extract_strided_slice %2 {offsets = [0, 1], sizes = [8, 1], strides = [1, 1]} : vector<8x4xi32> to vector<8x1xi32>
    %18 = vector.extract_strided_slice %4 {offsets = [0, 1], sizes = [8, 1], strides = [1, 1]} : vector<8x4xi32> to vector<8x1xi32>
    %c100_i32_1 = arith.constant 100 : i32
    %19 = vector.broadcast %c100_i32_1 : i32 to vector<8x1xi32>
    %20 = arith.addi %18, %19 : vector<8x1xi32>
    %21 = vector.broadcast %17 : vector<8x1xi32> to vector<8x128xi32>
    %22 = arith.cmpi eq, %5, %21 : vector<8x128xi32>
    %23 = vector.broadcast %20 : vector<8x1xi32> to vector<8x128xi32>
    %24 = arith.cmpi eq, %5, %23 : vector<8x128xi32>
    %25 = arith.ori %22, %24 : vector<8x128xi1>
    %26 = arith.extui %25 : vector<8x128xi1> to vector<8x128xi32>
    %27 = arith.sitofp %26 : vector<8x128xi32> to vector<8x128xf32>
    %28 = vector.extract_strided_slice %2 {offsets = [0, 2], sizes = [8, 1], strides = [1, 1]} : vector<8x4xi32> to vector<8x1xi32>
    %29 = vector.extract_strided_slice %4 {offsets = [0, 2], sizes = [8, 1], strides = [1, 1]} : vector<8x4xi32> to vector<8x1xi32>
    %c100_i32_2 = arith.constant 100 : i32
    %30 = vector.broadcast %c100_i32_2 : i32 to vector<8x1xi32>
    %31 = arith.addi %29, %30 : vector<8x1xi32>
    %32 = vector.broadcast %28 : vector<8x1xi32> to vector<8x128xi32>
    %33 = arith.cmpi eq, %5, %32 : vector<8x128xi32>
    %34 = vector.broadcast %31 : vector<8x1xi32> to vector<8x128xi32>
    %35 = arith.cmpi eq, %5, %34 : vector<8x128xi32>
    %36 = arith.ori %33, %35 : vector<8x128xi1>
    %37 = arith.extui %36 : vector<8x128xi1> to vector<8x128xi32>
    %38 = arith.sitofp %37 : vector<8x128xi32> to vector<8x128xf32>
    %39 = vector.extract_strided_slice %2 {offsets = [0, 3], sizes = [8, 1], strides = [1, 1]} : vector<8x4xi32> to vector<8x1xi32>
    %40 = vector.extract_strided_slice %4 {offsets = [0, 3], sizes = [8, 1], strides = [1, 1]} : vector<8x4xi32> to vector<8x1xi32>
    %c100_i32_3 = arith.constant 100 : i32
    %41 = vector.broadcast %c100_i32_3 : i32 to vector<8x1xi32>
    %42 = arith.addi %40, %41 : vector<8x1xi32>
    %43 = vector.broadcast %39 : vector<8x1xi32> to vector<8x128xi32>
    %44 = arith.cmpi eq, %5, %43 : vector<8x128xi32>
    %45 = vector.broadcast %42 : vector<8x1xi32> to vector<8x128xi32>
    %46 = arith.cmpi eq, %5, %45 : vector<8x128xi32>
    %47 = arith.ori %44, %46 : vector<8x128xi1>
    %48 = arith.extui %47 : vector<8x128xi1> to vector<8x128xi32>
    %49 = arith.sitofp %48 : vector<8x128xi32> to vector<8x128xf32>
    %50 = tpu.concatenate %16, %27, %38, %49 in 1 : vector<8x128xf32>, vector<8x128xf32>, vector<8x128xf32>, vector<8x128xf32> -> vector<8x512xf32>
    %c0_4 = arith.constant 0 : index
    %c0_5 = arith.constant 0 : index
    %51 = vector.load %arg2[%c0_4, %c0_5] : memref<512x128xf32, #tpu.memory_space<vmem>>, vector<512x128xf32>
    %cst = arith.constant dense<0.000000e+00> : vector<8x128xf32>
    %52 = tpu.matmul %50, %51, %cst {dimension_numbers = #tpu.dot_dimension_numbers<[1], [0], [0], [1], [0, 0, 1, 1], [], []>} : vector<8x512xf32>, vector<512x128xf32>, vector<8x128xf32> -> vector<8x128xf32>
    %c0_6 = arith.constant 0 : index
    %c0_7 = arith.constant 0 : index
    %53 = vector.load %arg3[%c0_6, %c0_7] : memref<128x128xf32, #tpu.memory_space<vmem>>, vector<128x128xf32>
    %cst_8 = arith.constant dense<0.000000e+00> : vector<8x128xf32>
    %54 = tpu.matmul %52, %53, %cst_8 {dimension_numbers = #tpu.dot_dimension_numbers<[1], [0], [0], [1], [0, 0, 1, 1], [], []>} : vector<8x128xf32>, vector<128x128xf32>, vector<8x128xf32> -> vector<8x128xf32>
    %cst_9 = arith.constant 3.125000e-02 : f32
    %55 = vector.broadcast %cst_9 : f32 to vector<8x128xf32>
    %56 = arith.mulf %54, %55 : vector<8x128xf32>
    %57 = arith.subf %52, %56 : vector<8x128xf32>
    %58 = arith.mulf %57, %57 : vector<8x128xf32>
    %cst_10 = arith.constant dense<0.000000e+00> : vector<8x128xf32>
    %59 = tpu.matmul %58, %53, %cst_10 {dimension_numbers = #tpu.dot_dimension_numbers<[1], [0], [0], [1], [0, 0, 1, 1], [], []>} : vector<8x128xf32>, vector<128x128xf32>, vector<8x128xf32> -> vector<8x128xf32>
    %cst_11 = arith.constant 3.125000e-02 : f32
    %60 = vector.broadcast %cst_11 : f32 to vector<8x128xf32>
    %61 = arith.mulf %59, %60 : vector<8x128xf32>
    %cst_12 = arith.constant 9.99999996E-13 : f32
    %62 = vector.broadcast %cst_12 : f32 to vector<8x128xf32>
    %63 = arith.addf %61, %62 : vector<8x128xf32>
    %64 = math.rsqrt %63 : vector<8x128xf32>
    %65 = arith.mulf %57, %64 : vector<8x128xf32>
    %c0_13 = arith.constant 0 : index
    %c0_14 = arith.constant 0 : index
    %66 = vector.load %arg4[%c0_13, %c0_14] : memref<1x128xf32, #tpu.memory_space<vmem>>, vector<1x128xf32>
    %67 = vector.broadcast %66 : vector<1x128xf32> to vector<8x128xf32>
    %68 = arith.mulf %65, %67 : vector<8x128xf32>
    %c0_15 = arith.constant 0 : index
    %c0_16 = arith.constant 0 : index
    %69 = vector.load %arg5[%c0_15, %c0_16] : memref<1x128xf32, #tpu.memory_space<vmem>>, vector<1x128xf32>
    %70 = vector.broadcast %69 : vector<1x128xf32> to vector<8x128xf32>
    %71 = arith.addf %68, %70 : vector<8x128xf32>
    %c0_17 = arith.constant 0 : index
    %c0_18 = arith.constant 0 : index
    %72 = vector.load %arg6[%c0_17, %c0_18] : memref<8x128xf32, #tpu.memory_space<vmem>>, vector<8x128xf32>
    tpu.vector_store %arg6[%c0_17, %c0_18], %71 {strides = array<i32>} : memref<8x128xf32, #tpu.memory_space<vmem>>, vector<8x128xf32>,
    return
  }
  func.func @transform_0(%arg0: i32) -> (i32, i32) {
    %c0_i32 = arith.constant 0 : i32
    %c0_i32_0 = arith.constant 0 : i32
    return %arg0, %c0_i32 : i32, i32
  }
  func.func @transform_1(%arg0: i32) -> (i32, i32) {
    %c0_i32 = arith.constant 0 : i32
    %c0_i32_0 = arith.constant 0 : i32
    %c0_i32_1 = arith.constant 0 : i32
    return %c0_i32, %c0_i32_0 : i32, i32
  }
  func.func @transform_2(%arg0: i32) -> (i32, i32) {
    %c0_i32 = arith.constant 0 : i32
    %c0_i32_0 = arith.constant 0 : i32
    %c0_i32_1 = arith.constant 0 : i32
    return %c0_i32, %c0_i32_0 : i32, i32
  }
  func.func @transform_3(%arg0: i32) -> (i32, i32) {
    %c0_i32 = arith.constant 0 : i32
    %c0_i32_0 = arith.constant 0 : i32
    %c0_i32_1 = arith.constant 0 : i32
    return %c0_i32, %c0_i32_0 : i32, i32
  }
  func.func @transform_4(%arg0: i32) -> (i32, i32) {
    %c0_i32 = arith.constant 0 : i32
    %c0_i32_0 = arith.constant 0 : i32
    %c0_i32_1 = arith.constant 0 : i32
    return %c0_i32, %c0_i32_0 : i32, i32
  }
  func.func @transform_5(%arg0: i32) -> (i32, i32) {
    %c0_i32 = arith.constant 0 : i32
    %c0_i32_0 = arith.constant 0 : i32
    return %arg0, %c0_i32 : i32, i32
  }
}

</mosaic_0001>

<bundles_post_ra>
// kernel: tpu_custom_call.1
= control target key start
LH: loop header
LB: loop body
LE: loop exit
PB: predicated region body
PF: predicated region fallthrough
CT: control target
= control target key end

     0   :  { %10 = vsyncpa [#allocation3], 0  ;;  %s867_s0 = inlined_call_operand.vmem [shape: s32[8,4], index: 0, kind: input, shape index: {}]   ;;  %s868_s1 = inlined_call_operand.hbm [shape: f32[512,128], index: 1, kind: input, shape index: {}]   ;;  %s869_s2 = inlined_call_operand.hbm [shape: f32[128,128], index: 2, kind: input, shape index: {}]   ;;  %s870_s3 = inlined_call_operand.vmem [shape: f32[1,128], index: 3, kind: input, shape index: {}]   ;;  %s871_s4 = inlined_call_operand.vmem [shape: f32[1,128], index: 4, kind: input, shape index: {}]   ;;  %s872_s5 = inlined_call_operand.hbm [shape: f32[8,128], index: 5, kind: output, shape index: {}]  }
   0x1   :  { %11 = vsyncpa [#allocation6], 0 }
   0x2   :  { %12 = vsyncpa [#allocation4], 0  ;;  %s771_s18 = smov [#allocation2]  }
   0x3   :  { %s20_s19 = sshll.u32 %s771_s18, 4  ;;  %s21_s19 = int_to_ptr.vmem [resolvable:$true] %s20_s19 }
   0x4   :  { %s713_s20 = scalar_lea.vmem %s21_s19, 8192  ;;  %p718_p1 = scmp.lt.s32.totalorder %s21_s19, %s21_s19 }
   0x5   :  { %p714_p0 = scmp.ne.s32.totalorder %s21_s19, %s713_s20  ;;  %p719_p2 = scmp.lt.s32.totalorder %s713_s20, %s713_s20 }
   0x7   :  { %p720_p3 = por %p719_p2, %p718_p1 }
   0x9   :  { %p721_p4 = pnand %p720_p3, %p714_p0 }
   0xb   :  { %724 = shalt.err (!%p721_p4)
}
   0xc   :  { %s772_s21 = smov 128   ;;  %s773_s22 = smov 8  }
   0xd   :  { %26 = dma.hbm_to_vmem [thread:$0]  %s868_s1, 8192, %s21_s19, [#allocation3], %s772_s21, %s772_s21, %s773_s22  }
   0xe   :  { %s774_s25 = smov [#allocation5]  }
   0xf   :  { %s32_s26 = sshll.u32 %s774_s25, 4  ;;  %s33_s26 = int_to_ptr.vmem [resolvable:$true] %s32_s26 }
  0x10   :  { %s733_s27 = scalar_lea.vmem %s33_s26, 2048  ;;  %p738_p6 = scmp.lt.s32.totalorder %s33_s26, %s33_s26 }
  0x11   :  { %p734_p5 = scmp.ne.s32.totalorder %s33_s26, %s733_s27  ;;  %p739_p7 = scmp.lt.s32.totalorder %s733_s27, %s733_s27 }
  0x13   :  { %p740_p8 = por %p739_p7, %p738_p6 }
  0x15   :  { %p741_p9 = pnand %p740_p8, %p734_p5 }
  0x17   :  { %744 = shalt.err (!%p741_p9)
}
  0x18   :  { %38 = dma.hbm_to_vmem [thread:$0]  %s869_s2, 2048, %s33_s26, [#allocation6], %s772_s21, %s772_s21, %s773_s22  }
  0x19   :  { %765 = dma.done.wait [#allocation3], 8192  }
  0x1a   :  { %766 = vsyncadd [#allocation3], 4294959104 }
  0x1b   :  { %767 = dma.done.wait [#allocation6], 2048  }
  0x1c   :  { %768 = vsyncadd [#allocation6], 4294965248  ;;  %v775_v0 = vmov 3   ;;  %v776_v1 = vmov 1   ;;  %v49_v2 = vld [vmem:[%s867_s0] sm:$0xff]  ;;  %v130_v3 = vld [vmem:[#allocation2 + $0xf8] sm:$0xff] }
  0x1d   :  { %696 = vset.pattern.permute.xlu1 %v775_v0  ;;  %695 = vset.pattern.permute.xlu0 %v776_v1  ;;  %v114_v4 = vld [vmem:[#allocation2 + $0x78] sm:$0xff]  ;;  %v50_v5 = vand.u32 65535, %v49_v2  ;;  %v51_v6 = vshra.s32 %v49_v2, 16  ;;  %v129_v7 = vld [vmem:[#allocation2 + $0xf0] sm:$0xff]  ;;  %v128_v12 = vld [vmem:[#allocation2 + $0xe8] sm:$0xff]  ;;  %v777_v17 = vmov 0  }
  0x1e   :  { %509 = vmatprep.subr.mxu0 %v130_v3  ;;  %v113_v8 = vld [vmem:[#allocation2 + $0x70] sm:$0xff]  ;;  %v162_v9 = vld [vmem:[#allocation2 + $0x1f8] sm:$0xff]  ;;  %v112_v14 = vld [vmem:[#allocation2 + $0x68] sm:$0xff]  ;;  %v778_v28 = vmov 2   ;;  %vm781_vm12 = vmmov 0   ;;  %s782_s8 = smov [#allocation7]  }
  0x1f   :  { %510 = vmatpush3.msra.mxu0 %v114_v4  ;;  %v146_v10 = vld [vmem:[#allocation2 + $0x178] sm:$0xff]  ;;  %89 = vperm.xlu1 %696, %v50_v5   ;;  %v54_v11 = vadd.s32 100, %v51_v6  ;;  %v161_v13 = vld [vmem:[#allocation2 + $0x1f0] sm:$0xff]  ;;  %v127_v15 = vld [vmem:[#allocation2 + $0xe0] sm:$0xff]  ;;  %s489_s9 = sshll.u32 %s782_s8, 4  ;;  %s490_s9 = int_to_ptr.vmem [resolvable:$true] %s489_s9 }
  0x20   :  { %67 = vperm.xlu0 %695, %v50_v5   ;;  %511 = vmatprep.subr.mxu0 %v129_v7  ;;  %v145_v16 = vld [vmem:[#allocation2 + $0x170] sm:$0xff]  ;;  %v111_v18 = vld [vmem:[#allocation2 + $0x60] sm:$0xff]  ;;  %v160_v19 = vld [vmem:[#allocation2 + $0x1e8] sm:$0xff]  ;;  %s745_s10 = scalar_lea.vmem %s490_s9, 128  ;;  %p750_p11 = scmp.lt.s32.totalorder %s490_s9, %s490_s9 }
  0x21   :  { %544 = vmatprep.subr.mxu1 %v162_v9  ;;  %512 = vmatpush3.msra.mxu0 %v113_v8  ;;  %v126_v20 = vld [vmem:[#allocation2 + $0xd8] sm:$0xff]  ;;  %v144_v22 = vld [vmem:[#allocation2 + $0x168] sm:$0xff]  ;;  %v125_v23 = vld [vmem:[#allocation2 + $0xd0] sm:$0xff]  ;;  %v779_v8 = vmov 0.0   ;;  %p746_p10 = scmp.ne.s32.totalorder %s490_s9, %s745_s10  ;;  %p751_p12 = scmp.lt.s32.totalorder %s745_s10, %s745_s10 }
  0x22   :  { %545 = vmatpush3.msra.mxu1 %v146_v10  ;;  %513 = vmatprep.subr.mxu0 %v128_v12  ;;  %v110_v21 = vld [vmem:[#allocation2 + $0x58] sm:$0xff]  ;;  %v159_v24 = vld [vmem:[#allocation2 + $0x1e0] sm:$0xff]  ;;  %v109_v25 = vld [vmem:[#allocation2 + $0x50] sm:$0xff]  ;;  %v52_v10 = vlaneseq }
  0x23   :  { %546 = vmatprep.subr.mxu1 %v161_v13  ;;  %93 = vperm.xlu1 %696, %v54_v11   ;;  %v143_v26 = vld [vmem:[#allocation2 + $0x160] sm:$0xff]  ;;  %v124_v27 = vld [vmem:[#allocation2 + $0xc8] sm:$0xff]  ;;  %v158_v29 = vld [vmem:[#allocation2 + $0x1d8] sm:$0xff]  ;;  %p752_p13 = por %p751_p12, %p750_p11 }
  0x24   :  { %697 = vset.pattern.permute.xlu0 %v777_v17  ;;  %514 = vmatpush3.msra.mxu0 %v112_v14  ;;  %v108_v30 = vld [vmem:[#allocation2 + $0x48] sm:$0xff]  ;;  %v142_v31 = vld [vmem:[#allocation2 + $0x158] sm:$0xff]  ;;  %v123_v32 = vld [vmem:[#allocation2 + $0xc0] sm:$0xff]  ;;  %v53_v13 = vand.u32 127, %v52_v10 }
  0x25   :  { %56 = vperm.xlu0 %697, %v50_v5   ;;  %515 = vmatprep.subr.mxu0 %v127_v15  ;;  %v157_v33 = vld [vmem:[#allocation2 + $0x1d0] sm:$0xff]  ;;  %v107_v34 = vld [vmem:[#allocation2 + $0x40] sm:$0xff]  ;;  %v122_v36 = vld [vmem:[#allocation2 + $0xb8] sm:$0xff]  ;;  %p753_p0 = pnand %p752_p13, %p746_p10 }
  0x26   :  { %547 = vmatpush3.msra.mxu1 %v145_v16  ;;  %516 = vmatpush3.msra.mxu0 %v111_v18  ;;  %v141_v35 = vld [vmem:[#allocation2 + $0x150] sm:$0xff]  ;;  %v156_v37 = vld [vmem:[#allocation2 + $0x1c8] sm:$0xff]  ;;  %v106_v38 = vld [vmem:[#allocation2 + $0x38] sm:$0xff]  ;;  %v780_v16 = vmov 1.0  }
  0x27   :  { %548 = vmatprep.subr.mxu1 %v160_v19  ;;  %699 = vset.pattern.permute.xlu1 %v777_v17  ;;  %v140_v39 = vld [vmem:[#allocation2 + $0x148] sm:$0xff]  ;;  %v121_v40 = vld [vmem:[#allocation2 + $0xb0] sm:$0xff]  ;;  %v155_v41 = vld [vmem:[#allocation2 + $0x1c0] sm:$0xff] }
  0x28   :  { %517 = vmatprep.subr.mxu0 %v126_v20  ;;  %60 = vperm.xlu1 %699, %v54_v11   ;;  %v105_v42 = vld [vmem:[#allocation2 + $0x30] sm:$0xff]  ;;  %v139_v43 = vld [vmem:[#allocation2 + $0x140] sm:$0xff]  ;;  %v120_v44 = vld [vmem:[#allocation2 + $0xa8] sm:$0xff] }
  0x29   :  { %698 = vset.pattern.permute.xlu0 %v776_v1  ;;  %518 = vmatpush3.msra.mxu0 %v110_v21  ;;  %v154_v45 = vld [vmem:[#allocation2 + $0x1b8] sm:$0xff]  ;;  %v104_v46 = vld [vmem:[#allocation2 + $0x28] sm:$0xff]  ;;  %v119_v48 = vld [vmem:[#allocation2 + $0xa0] sm:$0xff] }
  0x2a   :  { %71 = vperm.xlu0 %698, %v54_v11   ;;  %549 = vmatpush3.msra.mxu1 %v144_v22  ;;  %v138_v47 = vld [vmem:[#allocation2 + $0x138] sm:$0xff]  ;;  %v153_v49 = vld [vmem:[#allocation2 + $0x1b0] sm:$0xff]  ;;  %v103_v50 = vld [vmem:[#allocation2 + $0x20] sm:$0xff] }
  0x2b   :  { %519 = vmatprep.subr.mxu0 %v125_v23  ;;  %550 = vmatprep.subr.mxu1 %v159_v24  ;;  %v137_v51 = vld [vmem:[#allocation2 + $0x130] sm:$0xff]  ;;  %v118_v52 = vld [vmem:[#allocation2 + $0x98] sm:$0xff]  ;;  %v152_v53 = vld [vmem:[#allocation2 + $0x1a8] sm:$0xff] }
  0x2c   :  { %520 = vmatpush3.msra.mxu0 %v109_v25  ;;  %700 = vset.pattern.permute.xlu1 %v778_v28  ;;  %v102_v54 = vld [vmem:[#allocation2 + $0x18] sm:$0xff]  ;;  %v136_v55 = vld [vmem:[#allocation2 + $0x128] sm:$0xff]  ;;  %v117_v56 = vld [vmem:[#allocation2 + $0x90] sm:$0xff] }
  0x2d   :  { %551 = vmatpush3.msra.mxu1 %v143_v26  ;;  %78 = vperm.xlu1 %700, %v50_v5   ;;  %v151_v57 = vld [vmem:[#allocation2 + $0x1a0] sm:$0xff]  ;;  %v101_v58 = vld [vmem:[#allocation2 + $0x10] sm:$0xff]  ;;  %v116_v60 = vld [vmem:[#allocation2 + $0x88] sm:$0xff] }
  0x2e   :  { %701 = vset.pattern.permute.xlu0 %v778_v28  ;;  %521 = vmatprep.subr.mxu0 %v124_v27  ;;  %v135_v59 = vld [vmem:[#allocation2 + $0x120] sm:$0xff]  ;;  %v150_v61 = vld [vmem:[#allocation2 + $0x198] sm:$0xff]  ;;  %v100_v62 = vld [vmem:[#allocation2 + $0x8] sm:$0xff] }
  0x2f   :  { %82 = vperm.xlu0 %701, %v54_v11   ;;  %552 = vmatprep.subr.mxu1 %v158_v29  ;;  %v134_v63 = vld [vmem:[#allocation2 + $0x118] sm:$0xff]  ;;  %v115_v1 = vld [vmem:[#allocation2 + $0x80] sm:$0xff]  ;;  %v149_v2 = vld [vmem:[#allocation2 + $0x190] sm:$0xff] }
  0x30   :  { %522 = vmatpush3.msra.mxu0 %v108_v30  ;;  %553 = vmatpush3.msra.mxu1 %v142_v31  ;;  %v99_v3 = vld [vmem:[#allocation2] sm:$0xff]  ;;  %v133_v4 = vld [vmem:[#allocation2 + $0x110] sm:$0xff]  ;;  %v148_v5 = vld [vmem:[#allocation2 + $0x188] sm:$0xff] }
  0x31   :  { %523 = vmatprep.subr.mxu0 %v123_v32  ;;  %554 = vmatprep.subr.mxu1 %v157_v33  ;;  %v132_v6 = vld [vmem:[#allocation2 + $0x108] sm:$0xff]  ;;  %v147_v7 = vld [vmem:[#allocation2 + $0x180] sm:$0xff]  ;;  %v317_v20 = vld [vmem:[#allocation5 + $0x70] sm:$0xff] }
  0x32   :  { %524 = vmatpush3.msra.mxu0 %v107_v34  ;;  %555 = vmatpush3.msra.mxu1 %v141_v35  ;;  %v131_v9 = vld [vmem:[#allocation2 + $0x100] sm:$0xff]  ;;  %v316_v22 = vld [vmem:[#allocation5 + $0x68] sm:$0xff]  ;;  %v314_v24 = vld [vmem:[#allocation5 + $0x58] sm:$0xff] }
  0x33   :  { %525 = vmatprep.subr.mxu0 %v122_v36  ;;  %556 = vmatprep.subr.mxu1 %v156_v37  ;;  %v315_v23 = vld [vmem:[#allocation5 + $0x60] sm:$0xff]  ;;  %v313_v25 = vld [vmem:[#allocation5 + $0x50] sm:$0xff]  ;;  %v312_v26 = vld [vmem:[#allocation5 + $0x48] sm:$0xff] }
  0x34   :  { %526 = vmatpush3.msra.mxu0 %v106_v38  ;;  %557 = vmatpush3.msra.mxu1 %v140_v39  ;;  %v311_v27 = vld [vmem:[#allocation5 + $0x40] sm:$0xff]  ;;  %v310_v28 = vld [vmem:[#allocation5 + $0x38] sm:$0xff]  ;;  %v309_v29 = vld [vmem:[#allocation5 + $0x30] sm:$0xff] }
  0x35   :  { %527 = vmatprep.subr.mxu0 %v121_v40  ;;  %558 = vmatprep.subr.mxu1 %v155_v41  ;;  %v308_v30 = vld [vmem:[#allocation5 + $0x28] sm:$0xff]  ;;  %v307_v31 = vld [vmem:[#allocation5 + $0x20] sm:$0xff]  ;;  %v306_v32 = vld [vmem:[#allocation5 + $0x18] sm:$0xff] }
  0x36   :  { %528 = vmatpush3.msra.mxu0 %v105_v42  ;;  %559 = vmatpush3.msra.mxu1 %v139_v43  ;;  %v305_v33 = vld [vmem:[#allocation5 + $0x10] sm:$0xff]  ;;  %v304_v34 = vld [vmem:[#allocation5 + $0x8] sm:$0xff]  ;;  %v303_v35 = vld [vmem:[#allocation5] sm:$0xff] }
  0x37   :  { %529 = vmatprep.subr.mxu0 %v120_v44  ;;  %560 = vmatprep.subr.mxu1 %v154_v45 }
  0x38   :  { %530 = vmatpush3.msra.mxu0 %v104_v46  ;;  %561 = vmatpush3.msra.mxu1 %v138_v47 }
  0x39   :  { %531 = vmatprep.subr.mxu0 %v119_v48  ;;  %562 = vmatprep.subr.mxu1 %v153_v49 }
  0x3a   :  { %532 = vmatpush3.msra.mxu0 %v103_v50  ;;  %563 = vmatpush3.msra.mxu1 %v137_v51 }
  0x3b   :  { %533 = vmatprep.subr.mxu0 %v118_v52  ;;  %564 = vmatprep.subr.mxu1 %v152_v53  ;;  %v507_v53 = vld [vmem:[%s870_s3] ss:$0 sm:$0xff] }
  0x3c   :  { %534 = vmatpush3.msra.mxu0 %v102_v54  ;;  %565 = vmatpush3.msra.mxu1 %v136_v55  ;;  %v508_v55 = vld [vmem:[%s871_s4] ss:$0 sm:$0xff] }
  0x3d   :  { %535 = vmatprep.subr.mxu0 %v117_v56  ;;  %566 = vmatprep.subr.mxu1 %v151_v57 }
  0x3e   :  { %536 = vmatpush3.msra.mxu0 %v101_v58  ;;  %567 = vmatpush3.msra.mxu1 %v135_v59 }
  0x3f   :  { %537 = vmatprep.subr.mxu0 %v116_v60  ;;  %568 = vmatprep.subr.mxu1 %v150_v61 }
  0x40   :  { %538 = vmatpush3.msra.mxu0 %v100_v62  ;;  %569 = vmatpush3.msra.mxu1 %v134_v63 }
  0x41   :  { %539 = vmatprep.subr.mxu0 %v115_v1  ;;  %570 = vmatprep.subr.mxu1 %v149_v2 }
  0x42   :  { %540 = vmatpush3.msra.mxu0 %v99_v3  ;;  %571 = vmatpush3.msra.mxu1 %v133_v4 }
  0x43   :  { %613 = vmatprep.subr.mxu0 %v779_v8  ;;  %572 = vmatprep.subr.mxu1 %v148_v5 }
  0x44   :  { %702 = vset.pattern.permute.xlu0 %v775_v0  ;;  %573 = vmatpush3.msra.mxu1 %v132_v6  ;;  %v318_v0 = vld [vmem:[#allocation5 + $0x78] sm:$0xff] }
  0x45   :  { %574 = vmatprep.subr.mxu1 %v147_v7 }
  0x46   :  { %575 = vmatpush3.msra.mxu1 %v131_v9 }
  0x47   :  { %648 = vmatprep.subr.mxu1 %v779_v8 }
  0x9a   :  { %v90_v11 = vpop.permute.xlu1 %89 }
  0x9b   :  { %v68_v12 = vpop.permute.xlu0 %67  ;;  %vm91_vm0 = vcmp.eq.s32.totalorder %v53_v13, %v90_v11 }
  0x9c   :  { %vm69_vm4 = vcmp.eq.s32.totalorder %v53_v13, %v68_v12 }
  0x9e   :  { %v94_v14 = vpop.permute.xlu1 %93 }
  0x9f   :  { %vm95_vm1 = vcmp.eq.s32.totalorder %v53_v13, %v94_v14 }
  0xa0   :  { %v57_v15 = vpop.permute.xlu0 %56  ;;  %vm96_vm2 = vmor %vm91_vm0, %vm95_vm1 }
  0xa1   :  { %505 = vmatprep.mubr.msk.f32.mxu1 %vm96_vm2, %v780_v16  ;;  %vm58_vm6 = vcmp.eq.s32.totalorder %v53_v13, %v57_v15 }
  0xa3   :  { %v61_v17 = vpop.permute.xlu1 %60 }
  0xa4   :  { %vm62_vm3 = vcmp.eq.s32.totalorder %v53_v13, %v61_v17 }
  0xa5   :  { %v72_v18 = vpop.permute.xlu0 %71  ;;  %vm63_vm8 = vmor %vm58_vm6, %vm62_vm3 }
  0xa6   :  { %vm73_vm5 = vcmp.eq.s32.totalorder %v53_v13, %v72_v18 }
  0xa7   :  { %vm74_vm7 = vmor %vm69_vm4, %vm73_vm5 }
  0xa8   :  { %503 = vmatprep.mubr.msk.f32.mxu0 %vm74_vm7, %v780_v16  ;;  %v79_v19 = vpop.permute.xlu1 %78 }
  0xa9   :  { %504 = vmatmul.mubr.msk.f32.vlgmr.msra.gmra.mxu0 %vm63_vm8, %v780_v16  ;;  %vm80_vm9 = vcmp.eq.s32.totalorder %v53_v13, %v79_v19 }
  0xaa   :  { %v83_v21 = vpop.permute.xlu0 %82  ;;  %614 = vmatpush3.msra.mxu0 %v318_v0  ;;  %645 = vmatprep.mubr.msk.f32.mxu0 %vm781_vm12, %v779_v8 }
  0xab   :  { %vm84_vm10 = vcmp.eq.s32.totalorder %v53_v13, %v83_v21  ;;  %615 = vmatprep.subr.mxu0 %v779_v8 }
  0xac   :  { %vm85_vm11 = vmor %vm80_vm9, %vm84_vm10  ;;  %616 = vmatpush3.msra.mxu0 %v317_v20 }
  0xad   :  { %506 = vmatmul.mubr.msk.f32.vlgmr.msra.gmra.mxu1 %vm85_vm11, %v780_v16  ;;  %617 = vmatprep.subr.mxu0 %v779_v8 }
  0xae   :  { %618 = vmatpush3.msra.mxu0 %v316_v22  ;;  %649 = vmatpush3.msra.mxu1 %v318_v0 }
  0xaf   :  { %619 = vmatprep.subr.mxu0 %v779_v8  ;;  %650 = vmatprep.subr.mxu1 %v779_v8 }
  0xb0   :  { %620 = vmatpush3.msra.mxu0 %v315_v23  ;;  %651 = vmatpush3.msra.mxu1 %v317_v20 }
  0xb1   :  { %621 = vmatprep.subr.mxu0 %v779_v8  ;;  %652 = vmatprep.subr.mxu1 %v779_v8 }
  0xb2   :  { %622 = vmatpush3.msra.mxu0 %v314_v24  ;;  %653 = vmatpush3.msra.mxu1 %v316_v22 }
  0xb3   :  { %623 = vmatprep.subr.mxu0 %v779_v8  ;;  %654 = vmatprep.subr.mxu1 %v779_v8 }
  0xb4   :  { %624 = vmatpush3.msra.mxu0 %v313_v25  ;;  %655 = vmatpush3.msra.mxu1 %v315_v23 }
  0xb5   :  { %625 = vmatprep.subr.mxu0 %v779_v8  ;;  %656 = vmatprep.subr.mxu1 %v779_v8 }
  0xb6   :  { %626 = vmatpush3.msra.mxu0 %v312_v26  ;;  %657 = vmatpush3.msra.mxu1 %v314_v24 }
  0xb7   :  { %627 = vmatprep.subr.mxu0 %v779_v8  ;;  %658 = vmatprep.subr.mxu1 %v779_v8 }
  0xb8   :  { %628 = vmatpush3.msra.mxu0 %v311_v27  ;;  %659 = vmatpush3.msra.mxu1 %v313_v25 }
  0xb9   :  { %629 = vmatprep.subr.mxu0 %v779_v8  ;;  %660 = vmatprep.subr.mxu1 %v779_v8 }
  0xba   :  { %630 = vmatpush3.msra.mxu0 %v310_v28  ;;  %661 = vmatpush3.msra.mxu1 %v312_v26 }
  0xbb   :  { %631 = vmatprep.subr.mxu0 %v779_v8  ;;  %662 = vmatprep.subr.mxu1 %v779_v8 }
  0xbc   :  { %632 = vmatpush3.msra.mxu0 %v309_v29  ;;  %663 = vmatpush3.msra.mxu1 %v311_v27 }
  0xbd   :  { %633 = vmatprep.subr.mxu0 %v779_v8  ;;  %664 = vmatprep.subr.mxu1 %v779_v8 }
  0xbe   :  { %665 = vmatpush3.msra.mxu1 %v310_v28  ;;  %634 = vmatpush3.msra.mxu0 %v308_v30 }
  0xbf   :  { %666 = vmatprep.subr.mxu1 %v779_v8  ;;  %635 = vmatprep.subr.mxu0 %v779_v8 }
  0xc0   :  { %667 = vmatpush3.msra.mxu1 %v309_v29  ;;  %636 = vmatpush3.msra.mxu0 %v307_v31 }
  0xc1   :  { %668 = vmatprep.subr.mxu1 %v779_v8  ;;  %637 = vmatprep.subr.mxu0 %v779_v8 }
  0xc2   :  { %669 = vmatpush3.msra.mxu1 %v308_v30  ;;  %638 = vmatpush3.msra.mxu0 %v306_v32 }
  0xc3   :  { %670 = vmatprep.subr.mxu1 %v779_v8  ;;  %639 = vmatprep.subr.mxu0 %v779_v8 }
  0xc4   :  { %671 = vmatpush3.msra.mxu1 %v307_v31  ;;  %640 = vmatpush3.msra.mxu0 %v305_v33 }
  0xc5   :  { %672 = vmatprep.subr.mxu1 %v779_v8  ;;  %641 = vmatprep.subr.mxu0 %v779_v8 }
  0xc6   :  { %673 = vmatpush3.msra.mxu1 %v306_v32  ;;  %642 = vmatpush3.msra.mxu0 %v304_v34 }
  0xc7   :  { %674 = vmatprep.subr.mxu1 %v779_v8  ;;  %643 = vmatprep.subr.mxu0 %v779_v8 }
  0xc8   :  { %675 = vmatpush3.msra.mxu1 %v305_v33  ;;  %644 = vmatpush3.msra.mxu0 %v303_v35 }
  0xc9   :  { %676 = vmatprep.subr.mxu1 %v779_v8  ;;  %680 = vmatprep.mubr.msk.f32.mxu1 %vm781_vm12, %v779_v8 }
  0xca   :  { %677 = vmatpush3.msra.mxu1 %v304_v34 }
  0xcb   :  { %678 = vmatprep.subr.mxu1 %v779_v8 }
  0xcc   :  { %679 = vmatpush3.msra.mxu1 %v303_v35 }
 0x169   :  { %v541_v36 = vpop.f32.mrf.mxu0 }
 0x16b   :  { %v542_v37 = vpop.f32.mrf.mxu0 }
 0x16c   :  { %v543_v40 = vadd.f32 %v542_v37, %v541_v36 }
 0x16d   :  { %v576_v38 = vpop.f32.mrf.mxu1 }
 0x16f   :  { %v577_v39 = vpop.f32.mrf.mxu1 }
 0x170   :  { %v578_v41 = vadd.f32 %v577_v39, %v576_v38 }
 0x172   :  { %v300_v42 = vadd.f32 %v578_v41, %v543_v40 }
 0x174   :  { %646 = vmatmul.mubr.f32.vlgmr.msra.gmra.mxu0 %v300_v42 }
 0x234   :  { %v385_v43 = vpop.f32.mrf.mxu0 }
 0x235   :  { %v389_v44 = vmul.f32 0.03125, %v385_v43 }
 0x236   :  { %v647_v45 = vpop.f32.mrf.mxu0 }
 0x237   :  { %v390_v46 = vsub.f32 %v300_v42, %v389_v44 }
 0x239   :  { %v391_v47 = vmul.f32 %v390_v46, %v390_v46 }
 0x23b   :  { %681 = vmatmul.mubr.f32.vlgmr.msra.gmra.mxu1 %v391_v47 }
 0x2fb   :  { %v458_v48 = vpop.f32.mrf.mxu1 }
 0x2fc   :  { %v462_v49 = vmul.f32 0.03125, %v458_v48 }
 0x2fd   :  { %v682_v50 = vpop.f32.mrf.mxu1 }
 0x2fe   :  { %v463_v51 = vadd.f32 1e-12, %v462_v49 }
 0x300   :  { %703 = vrsqrt.f32 %v463_v51 }
 0x30d   :  { %v704_v52 = vpop.eup %703 }
 0x30e   :  { %v465_v54 = vmul.f32 %v704_v52, %v390_v46 }
 0x310   :  { %v473_v56 = vmul.f32 %v507_v53, %v465_v54 }
 0x312   :  { %v481_v57 = vadd.f32 %v508_v55, %v473_v56 }
 0x314   :  { %482 = vst [vmem:[#allocation7] sm:$0xff] %v481_v57 }
 0x315   :  { %756 = shalt.err (!%p753_p0)
}
 0x316   :  { %492 = dma.vmem_to_hbm [thread:$0]  %s490_s9, 128, %s872_s5, [#allocation4]  }
 0x317   :  { %769 = dma.done.wait [#allocation4], 128  }
 0x318   :  { %770 = vsyncadd [#allocation4], 4294967168 }
 0x319   :  { %496 = vsyncpa [#allocation3], 1 }
 0x31a   :  { %497 = vsyncpa [#allocation6], 1 }
 0x31b   :  { %498 = vsyncpa [#allocation4], 1 }

</bundles_post_ra>
